<compile_context>
chip_gen: v7x
topology: tpu7x:2x2x1
jax: 0.10.0
libtpu: 0.0.40
codegen_flags: <defaults>
</compile_context>

<pallas_src>
import numpy as np
import jax
import jax.numpy as jnp
from jax.experimental import pallas as pl
from jax.experimental.pallas import tpu as pltpu


def _gaussian_kernel1d(kernel_size: int, sigma):
    # Matches torchvision _get_gaussian_kernel1d.
    if sigma is None:
        sigma = kernel_size * 0.15 + 0.35
    half = (kernel_size - 1) * 0.5
    xs = np.linspace(-half, half, kernel_size)
    pdf = np.exp(-0.5 * (xs / float(sigma)) ** 2)
    k1 = (pdf / pdf.sum()).astype(np.float32)
    return [float(v) for v in k1]


def _gaussian_kernel2d(kernel_size: int, sigma):
    k1 = np.asarray(_gaussian_kernel1d(kernel_size, sigma), dtype=np.float64)
    return np.outer(k1, k1).astype(np.float32)


def _tpu_vmem_capacity_bytes():
    try:
        return int(pltpu.get_tpu_info().vmem_capacity_bytes)
    except Exception:
        return 64 * 1024 * 1024  # v7x per-TC physical VMEM (smallest current gen)


def _vmem_limit_bytes():
    # Leave headroom below physical VMEM so 2-deep pipelining survives on v7x
    # (64 MiB) while still letting v5e/v6e (128 MiB) run bigger tiles.
    return int(min(3 * _tpu_vmem_capacity_bytes() // 4, 96 * 1024 * 1024))


def _pick_h_block(H, C, W, itemsize, pad):
    """Largest H tile whose double-buffered working set fits a VMEM budget."""
    budget = min(_tpu_vmem_capacity_bytes() // 4, 24 * 1024 * 1024)

    def step_bytes(hb):
        blk = C * hb * W * itemsize                      # one (1,C,hb,W) block
        return 4 * blk + hb * (W + 2 * pad) * 4 + 4 * hb * W * 4

    # (8,128) rule: the sublane block dim must be a multiple of 8 or full H.
    if H % 8 != 0 or step_bytes(H) <= budget:
        return H
    best = 8
    for hb in range(8, H, 8):
        if H % hb == 0 and step_bytes(hb) <= budget:
            best = hb
    return best


def _make_blur_kernel(C, Hb, W, k1, pad):
    ks = len(k1)

    def reflect_c(idx):
        # Reflect (edge not repeated) into [0, C); valid because pad <= C-1.
        if idx < 0:
            return -idx
        if idx >= C:
            return 2 * C - 2 - idx
        return idx

    def kernel(y_ref, o_ref, wpad_ref):
        # y_ref / o_ref : (1, C, Hb, W) block of the NCHW array.
        # wpad_ref      : (Hb, W + 2*pad) f32 scratch (reflect pad along W).
        # NOTE: the channel loop fully unrolls; fine for the small C this
        # module sees.  # TODO(synk): lax.fori_loop + dynamic channel index
        # for very large C to keep compile time bounded.
        for c in range(C):
            # ---- pass 1: 1D blur along C; taps are free leading-axis views.
            t = None
            for i in range(ks):
                src = reflect_c(c + i - pad)
                tap = y_ref[0, src].astype(jnp.float32) * k1[i]     # (Hb, W)
                t = tap if t is None else t + tap

            # ---- pass 2: 1D blur along W (lane axis); reflect pad fused into
            # a small per-channel scratch; taps are static lane-offset slices.
            wpad_ref[:, pad:pad + W] = t
            for e in range(pad):
                wpad_ref[:, pad - 1 - e:pad - e] = t[:, e + 1:e + 2]
                wpad_ref[:, pad + W + e:pad + W + e + 1] = t[:, W - 2 - e:W - 1 - e]
            acc = k1[0] * wpad_ref[:, 0:W]
            for i in range(1, ks):
                acc = acc + k1[i] * wpad_ref[:, i:i + W]            # (Hb, W)

            o_ref[0, c] = acc.astype(o_ref.dtype)

    return kernel


def gaussian_blur(x, kernel_size=3, sigma=None):
    """x: (N, C, H, W) -> (N, C, H, W); same semantics as the torch module."""
    N, C, H, W = x.shape
    assert kernel_size % 2 == 1 and kernel_size > 0, "kernel_size must be odd"
    pad = kernel_size // 2
    # Reflect padding (torch semantics) requires the padded axes longer than pad.
    assert C > pad and W > pad, "reflect padding needs C, W > kernel_size // 2"
    k1 = _gaussian_kernel1d(kernel_size, sigma)

    Hb = _pick_h_block(H, C, W, x.dtype.itemsize, pad)
    assert H % Hb == 0, "H tile must evenly divide H"
    grid = (N, H // Hb)

    return pl.pallas_call(
        _make_blur_kernel(C, Hb, W, k1, pad),
        out_shape=jax.ShapeDtypeStruct((N, C, H, W), x.dtype),
        grid_spec=pltpu.PrefetchScalarGridSpec(
            num_scalar_prefetch=0,
            grid=grid,
            in_specs=[pl.BlockSpec((1, C, Hb, W), lambda n, h: (n, 0, h, 0))],
            out_specs=pl.BlockSpec((1, C, Hb, W), lambda n, h: (n, 0, h, 0)),
            scratch_shapes=[pltpu.VMEM((Hb, W + 2 * pad), jnp.float32)],
        ),
        compiler_params=pltpu.CompilerParams(
            dimension_semantics=("parallel", "parallel"),
            vmem_limit_bytes=_vmem_limit_bytes(),
        ),
    )(x)


def _reference_blur(x_np, kernel_size=3, sigma=None):
    # Pure-numpy reference of the exact torch module semantics.
    k2 = _gaussian_kernel2d(kernel_size, sigma)
    pad = kernel_size // 2
    y = np.transpose(x_np, (0, 2, 3, 1))                          # NHWC
    N, H, W, C = y.shape
    yp = np.pad(y, ((0, 0), (0, 0), (pad, pad), (pad, pad)), mode="reflect")
    out = np.zeros_like(y, dtype=np.float32)
    for i in range(kernel_size):
        for j in range(kernel_size):
            out += k2[i, j] * yp[:, :, i:i + W, j:j + C]
    return np.transpose(out, (0, 3, 1, 2))                        # NCHW


if __name__ == "__main__":
    key = jax.random.PRNGKey(0)
    x = jax.random.normal(key, (2, 4, 16, 16), dtype=jnp.float32)

    out = gaussian_blur(x, kernel_size=3, sigma=None)
    out = jax.block_until_ready(out)

    ref = _reference_blur(np.asarray(x), kernel_size=3, sigma=None)
    assert out.shape == (2, 4, 16, 16)
    np.testing.assert_allclose(np.asarray(out), ref, rtol=1e-5, atol=1e-5)

    print("KERNEL_OK")
</pallas_src>

<mosaic_0001>
module attributes {stable_mosaic.version = 11 : i64} {
  func.func @kernel(%arg0: i32, %arg1: i32, %arg2: memref<1x4x16x16xf32, #tpu.memory_space<vmem>>, %arg3: memref<1x4x16x16xf32, #tpu.memory_space<vmem>>, %arg4: memref<16x18xf32, #tpu.memory_space<vmem>>) attributes {dimension_semantics = [#tpu.dimension_semantics<parallel>, #tpu.dimension_semantics<parallel>], iteration_bounds = array<i64: 2, 1>, scalar_prefetch = 0 : i64, scratch_operands = 1 : i64, tpu.core_type = #tpu.core_type<tc>, window_params = [{transform_indices = @transform_0, window_bounds = array<i64: 1, 4, 16, 16>}, {transform_indices = @transform_1, window_bounds = array<i64: 1, 4, 16, 16>}]} {
    %c0 = arith.constant 0 : index
    %c1 = arith.constant 1 : index
    %c0_0 = arith.constant 0 : index
    %c0_1 = arith.constant 0 : index
    %0 = vector.load %arg2[%c0, %c1, %c0_0, %c0_1] : memref<1x4x16x16xf32, #tpu.memory_space<vmem>>, vector<1x1x16x16xf32>
    %1 = vector.shape_cast %0 : vector<1x1x16x16xf32> to vector<16x16xf32>
    %cst = arith.constant 0.238994271 : f32
    %2 = vector.broadcast %cst : f32 to vector<16x16xf32>
    %3 = arith.mulf %1, %2 : vector<16x16xf32>
    %c0_2 = arith.constant 0 : index
    %c0_3 = arith.constant 0 : index
    %c0_4 = arith.constant 0 : index
    %c0_5 = arith.constant 0 : index
    %4 = vector.load %arg2[%c0_2, %c0_3, %c0_4, %c0_5] : memref<1x4x16x16xf32, #tpu.memory_space<vmem>>, vector<1x1x16x16xf32>
    %5 = vector.shape_cast %4 : vector<1x1x16x16xf32> to vector<16x16xf32>
    %cst_6 = arith.constant 0.522011459 : f32
    %6 = vector.broadcast %cst_6 : f32 to vector<16x16xf32>
    %7 = arith.mulf %5, %6 : vector<16x16xf32>
    %8 = arith.addf %3, %7 : vector<16x16xf32>
    %c0_7 = arith.constant 0 : index
    %c1_8 = arith.constant 1 : index
    %c0_9 = arith.constant 0 : index
    %c0_10 = arith.constant 0 : index
    %9 = vector.load %arg2[%c0_7, %c1_8, %c0_9, %c0_10] : memref<1x4x16x16xf32, #tpu.memory_space<vmem>>, vector<1x1x16x16xf32>
    %10 = vector.shape_cast %9 : vector<1x1x16x16xf32> to vector<16x16xf32>
    %cst_11 = arith.constant 0.238994271 : f32
    %11 = vector.broadcast %cst_11 : f32 to vector<16x16xf32>
    %12 = arith.mulf %10, %11 : vector<16x16xf32>
    %13 = arith.addf %8, %12 : vector<16x16xf32>
    %c0_12 = arith.constant 0 : index
    %c1_13 = arith.constant 1 : index
    %14 = vector.load %arg4[%c0_12, %c1_13] : memref<16x18xf32, #tpu.memory_space<vmem>>, vector<16x16xf32>
    tpu.vector_store %arg4[%c0_12, %c1_13], %13 {strides = array<i32>} : memref<16x18xf32, #tpu.memory_space<vmem>>, vector<16x16xf32>,
    %15 = vector.extract_strided_slice %13 {offsets = [0, 1], sizes = [16, 1], strides = [1, 1]} : vector<16x16xf32> to vector<16x1xf32>
    %c0_14 = arith.constant 0 : index
    %c0_15 = arith.constant 0 : index
    %16 = vector.load %arg4[%c0_14, %c0_15] : memref<16x18xf32, #tpu.memory_space<vmem>>, vector<16x1xf32>
    tpu.vector_store %arg4[%c0_14, %c0_15], %15 {strides = array<i32>} : memref<16x18xf32, #tpu.memory_space<vmem>>, vector<16x1xf32>,
    %17 = vector.extract_strided_slice %13 {offsets = [0, 14], sizes = [16, 1], strides = [1, 1]} : vector<16x16xf32> to vector<16x1xf32>
    %c0_16 = arith.constant 0 : index
    %c17 = arith.constant 17 : index
    %18 = vector.load %arg4[%c0_16, %c17] : memref<16x18xf32, #tpu.memory_space<vmem>>, vector<16x1xf32>
    tpu.vector_store %arg4[%c0_16, %c17], %17 {strides = array<i32>} : memref<16x18xf32, #tpu.memory_space<vmem>>, vector<16x1xf32>,
    %c0_17 = arith.constant 0 : index
    %c0_18 = arith.constant 0 : index
    %19 = vector.load %arg4[%c0_17, %c0_18] : memref<16x18xf32, #tpu.memory_space<vmem>>, vector<16x16xf32>
    %cst_19 = arith.constant 0.238994271 : f32
    %20 = vector.broadcast %cst_19 : f32 to vector<16x16xf32>
    %21 = arith.mulf %20, %19 : vector<16x16xf32>
    %c0_20 = arith.constant 0 : index
    %c1_21 = arith.constant 1 : index
    %22 = vector.load %arg4[%c0_20, %c1_21] : memref<16x18xf32, #tpu.memory_space<vmem>>, vector<16x16xf32>
    %cst_22 = arith.constant 0.522011459 : f32
    %23 = vector.broadcast %cst_22 : f32 to vector<16x16xf32>
    %24 = arith.mulf %23, %22 : vector<16x16xf32>
    %25 = arith.addf %21, %24 : vector<16x16xf32>
    %c0_23 = arith.constant 0 : index
    %c2 = arith.constant 2 : index
    %26 = vector.load %arg4[%c0_23, %c2] : memref<16x18xf32, #tpu.memory_space<vmem>>, vector<16x16xf32>
    %cst_24 = arith.constant 0.238994271 : f32
    %27 = vector.broadcast %cst_24 : f32 to vector<16x16xf32>
    %28 = arith.mulf %27, %26 : vector<16x16xf32>
    %29 = arith.addf %25, %28 : vector<16x16xf32>
    %c0_25 = arith.constant 0 : index
    %c0_26 = arith.constant 0 : index
    %c0_27 = arith.constant 0 : index
    %c0_28 = arith.constant 0 : index
    %30 = vector.load %arg3[%c0_25, %c0_26, %c0_27, %c0_28] : memref<1x4x16x16xf32, #tpu.memory_space<vmem>>, vector<1x1x16x16xf32>
    %31 = vector.shape_cast %30 : vector<1x1x16x16xf32> to vector<16x16xf32>
    %32 = vector.shape_cast %29 : vector<16x16xf32> to vector<1x1x16x16xf32>
    tpu.vector_store %arg3[%c0_25, %c0_26, %c0_27, %c0_28], %32 {strides = array<i32>} : memref<1x4x16x16xf32, #tpu.memory_space<vmem>>, vector<1x1x16x16xf32>,
    %c0_29 = arith.constant 0 : index
    %c0_30 = arith.constant 0 : index
    %c0_31 = arith.constant 0 : index
    %c0_32 = arith.constant 0 : index
    %33 = vector.load %arg2[%c0_29, %c0_30, %c0_31, %c0_32] : memref<1x4x16x16xf32, #tpu.memory_space<vmem>>, vector<1x1x16x16xf32>
    %34 = vector.shape_cast %33 : vector<1x1x16x16xf32> to vector<16x16xf32>
    %cst_33 = arith.constant 0.238994271 : f32
    %35 = vector.broadcast %cst_33 : f32 to vector<16x16xf32>
    %36 = arith.mulf %34, %35 : vector<16x16xf32>
    %c0_34 = arith.constant 0 : index
    %c1_35 = arith.constant 1 : index
    %c0_36 = arith.constant 0 : index
    %c0_37 = arith.constant 0 : index
    %37 = vector.load %arg2[%c0_34, %c1_35, %c0_36, %c0_37] : memref<1x4x16x16xf32, #tpu.memory_space<vmem>>, vector<1x1x16x16xf32>
    %38 = vector.shape_cast %37 : vector<1x1x16x16xf32> to vector<16x16xf32>
    %cst_38 = arith.constant 0.522011459 : f32
    %39 = vector.broadcast %cst_38 : f32 to vector<16x16xf32>
    %40 = arith.mulf %38, %39 : vector<16x16xf32>
    %41 = arith.addf %36, %40 : vector<16x16xf32>
    %c0_39 = arith.constant 0 : index
    %c2_40 = arith.constant 2 : index
    %c0_41 = arith.constant 0 : index
    %c0_42 = arith.constant 0 : index
    %42 = vector.load %arg2[%c0_39, %c2_40, %c0_41, %c0_42] : memref<1x4x16x16xf32, #tpu.memory_space<vmem>>, vector<1x1x16x16xf32>
    %43 = vector.shape_cast %42 : vector<1x1x16x16xf32> to vector<16x16xf32>
    %cst_43 = arith.constant 0.238994271 : f32
    %44 = vector.broadcast %cst_43 : f32 to vector<16x16xf32>
    %45 = arith.mulf %43, %44 : vector<16x16xf32>
    %46 = arith.addf %41, %45 : vector<16x16xf32>
    %c0_44 = arith.constant 0 : index
    %c1_45 = arith.constant 1 : index
    %47 = vector.load %arg4[%c0_44, %c1_45] : memref<16x18xf32, #tpu.memory_space<vmem>>, vector<16x16xf32>
    tpu.vector_store %arg4[%c0_44, %c1_45], %46 {strides = array<i32>} : memref<16x18xf32, #tpu.memory_space<vmem>>, vector<16x16xf32>,
    %48 = vector.extract_strided_slice %46 {offsets = [0, 1], sizes = [16, 1], strides = [1, 1]} : vector<16x16xf32> to vector<16x1xf32>
    %c0_46 = arith.constant 0 : index
    %c0_47 = arith.constant 0 : index
    %49 = vector.load %arg4[%c0_46, %c0_47] : memref<16x18xf32, #tpu.memory_space<vmem>>, vector<16x1xf32>
    tpu.vector_store %arg4[%c0_46, %c0_47], %48 {strides = array<i32>} : memref<16x18xf32, #tpu.memory_space<vmem>>, vector<16x1xf32>,
    %50 = vector.extract_strided_slice %46 {offsets = [0, 14], sizes = [16, 1], strides = [1, 1]} : vector<16x16xf32> to vector<16x1xf32>
    %c0_48 = arith.constant 0 : index
    %c17_49 = arith.constant 17 : index
    %51 = vector.load %arg4[%c0_48, %c17_49] : memref<16x18xf32, #tpu.memory_space<vmem>>, vector<16x1xf32>
    tpu.vector_store %arg4[%c0_48, %c17_49], %50 {strides = array<i32>} : memref<16x18xf32, #tpu.memory_space<vmem>>, vector<16x1xf32>,
    %c0_50 = arith.constant 0 : index
    %c0_51 = arith.constant 0 : index
    %52 = vector.load %arg4[%c0_50, %c0_51] : memref<16x18xf32, #tpu.memory_space<vmem>>, vector<16x16xf32>
    %cst_52 = arith.constant 0.238994271 : f32
    %53 = vector.broadcast %cst_52 : f32 to vector<16x16xf32>
    %54 = arith.mulf %53, %52 : vector<16x16xf32>
    %c0_53 = arith.constant 0 : index
    %c1_54 = arith.constant 1 : index
    %55 = vector.load %arg4[%c0_53, %c1_54] : memref<16x18xf32, #tpu.memory_space<vmem>>, vector<16x16xf32>
    %cst_55 = arith.constant 0.522011459 : f32
    %56 = vector.broadcast %cst_55 : f32 to vector<16x16xf32>
    %57 = arith.mulf %56, %55 : vector<16x16xf32>
    %58 = arith.addf %54, %57 : vector<16x16xf32>
    %c0_56 = arith.constant 0 : index
    %c2_57 = arith.constant 2 : index
    %59 = vector.load %arg4[%c0_56, %c2_57] : memref<16x18xf32, #tpu.memory_space<vmem>>, vector<16x16xf32>
    %cst_58 = arith.constant 0.238994271 : f32
    %60 = vector.broadcast %cst_58 : f32 to vector<16x16xf32>
    %61 = arith.mulf %60, %59 : vector<16x16xf32>
    %62 = arith.addf %58, %61 : vector<16x16xf32>
    %c0_59 = arith.constant 0 : index
    %c1_60 = arith.constant 1 : index
    %c0_61 = arith.constant 0 : index
    %c0_62 = arith.constant 0 : index
    %63 = vector.load %arg3[%c0_59, %c1_60, %c0_61, %c0_62] : memref<1x4x16x16xf32, #tpu.memory_space<vmem>>, vector<1x1x16x16xf32>
    %64 = vector.shape_cast %63 : vector<1x1x16x16xf32> to vector<16x16xf32>
    %65 = vector.shape_cast %62 : vector<16x16xf32> to vector<1x1x16x16xf32>
    tpu.vector_store %arg3[%c0_59, %c1_60, %c0_61, %c0_62], %65 {strides = array<i32>} : memref<1x4x16x16xf32, #tpu.memory_space<vmem>>, vector<1x1x16x16xf32>,
    %c0_63 = arith.constant 0 : index
    %c1_64 = arith.constant 1 : index
    %c0_65 = arith.constant 0 : index
    %c0_66 = arith.constant 0 : index
    %66 = vector.load %arg2[%c0_63, %c1_64, %c0_65, %c0_66] : memref<1x4x16x16xf32, #tpu.memory_space<vmem>>, vector<1x1x16x16xf32>
    %67 = vector.shape_cast %66 : vector<1x1x16x16xf32> to vector<16x16xf32>
    %cst_67 = arith.constant 0.238994271 : f32
    %68 = vector.broadcast %cst_67 : f32 to vector<16x16xf32>
    %69 = arith.mulf %67, %68 : vector<16x16xf32>
    %c0_68 = arith.constant 0 : index
    %c2_69 = arith.constant 2 : index
    %c0_70 = arith.constant 0 : index
    %c0_71 = arith.constant 0 : index
    %70 = vector.load %arg2[%c0_68, %c2_69, %c0_70, %c0_71] : memref<1x4x16x16xf32, #tpu.memory_space<vmem>>, vector<1x1x16x16xf32>
    %71 = vector.shape_cast %70 : vector<1x1x16x16xf32> to vector<16x16xf32>
    %cst_72 = arith.constant 0.522011459 : f32
    %72 = vector.broadcast %cst_72 : f32 to vector<16x16xf32>
    %73 = arith.mulf %71, %72 : vector<16x16xf32>
    %74 = arith.addf %69, %73 : vector<16x16xf32>
    %c0_73 = arith.constant 0 : index
    %c3 = arith.constant 3 : index
    %c0_74 = arith.constant 0 : index
    %c0_75 = arith.constant 0 : index
    %75 = vector.load %arg2[%c0_73, %c3, %c0_74, %c0_75] : memref<1x4x16x16xf32, #tpu.memory_space<vmem>>, vector<1x1x16x16xf32>
    %76 = vector.shape_cast %75 : vector<1x1x16x16xf32> to vector<16x16xf32>
    %cst_76 = arith.constant 0.238994271 : f32
    %77 = vector.broadcast %cst_76 : f32 to vector<16x16xf32>
    %78 = arith.mulf %76, %77 : vector<16x16xf32>
    %79 = arith.addf %74, %78 : vector<16x16xf32>
    %c0_77 = arith.constant 0 : index
    %c1_78 = arith.constant 1 : index
    %80 = vector.load %arg4[%c0_77, %c1_78] : memref<16x18xf32, #tpu.memory_space<vmem>>, vector<16x16xf32>
    tpu.vector_store %arg4[%c0_77, %c1_78], %79 {strides = array<i32>} : memref<16x18xf32, #tpu.memory_space<vmem>>, vector<16x16xf32>,
    %81 = vector.extract_strided_slice %79 {offsets = [0, 1], sizes = [16, 1], strides = [1, 1]} : vector<16x16xf32> to vector<16x1xf32>
    %c0_79 = arith.constant 0 : index
    %c0_80 = arith.constant 0 : index
    %82 = vector.load %arg4[%c0_79, %c0_80] : memref<16x18xf32, #tpu.memory_space<vmem>>, vector<16x1xf32>
    tpu.vector_store %arg4[%c0_79, %c0_80], %81 {strides = array<i32>} : memref<16x18xf32, #tpu.memory_space<vmem>>, vector<16x1xf32>,
    %83 = vector.extract_strided_slice %79 {offsets = [0, 14], sizes = [16, 1], strides = [1, 1]} : vector<16x16xf32> to vector<16x1xf32>
    %c0_81 = arith.constant 0 : index
    %c17_82 = arith.constant 17 : index
    %84 = vector.load %arg4[%c0_81, %c17_82] : memref<16x18xf32, #tpu.memory_space<vmem>>, vector<16x1xf32>
    tpu.vector_store %arg4[%c0_81, %c17_82], %83 {strides = array<i32>} : memref<16x18xf32, #tpu.memory_space<vmem>>, vector<16x1xf32>,
    %c0_83 = arith.constant 0 : index
    %c0_84 = arith.constant 0 : index
    %85 = vector.load %arg4[%c0_83, %c0_84] : memref<16x18xf32, #tpu.memory_space<vmem>>, vector<16x16xf32>
    %cst_85 = arith.constant 0.238994271 : f32
    %86 = vector.broadcast %cst_85 : f32 to vector<16x16xf32>
    %87 = arith.mulf %86, %85 : vector<16x16xf32>
    %c0_86 = arith.constant 0 : index
    %c1_87 = arith.constant 1 : index
    %88 = vector.load %arg4[%c0_86, %c1_87] : memref<16x18xf32, #tpu.memory_space<vmem>>, vector<16x16xf32>
    %cst_88 = arith.constant 0.522011459 : f32
    %89 = vector.broadcast %cst_88 : f32 to vector<16x16xf32>
    %90 = arith.mulf %89, %88 : vector<16x16xf32>
    %91 = arith.addf %87, %90 : vector<16x16xf32>
    %c0_89 = arith.constant 0 : index
    %c2_90 = arith.constant 2 : index
    %92 = vector.load %arg4[%c0_89, %c2_90] : memref<16x18xf32, #tpu.memory_space<vmem>>, vector<16x16xf32>
    %cst_91 = arith.constant 0.238994271 : f32
    %93 = vector.broadcast %cst_91 : f32 to vector<16x16xf32>
    %94 = arith.mulf %93, %92 : vector<16x16xf32>
    %95 = arith.addf %91, %94 : vector<16x16xf32>
    %c0_92 = arith.constant 0 : index
    %c2_93 = arith.constant 2 : index
    %c0_94 = arith.constant 0 : index
    %c0_95 = arith.constant 0 : index
    %96 = vector.load %arg3[%c0_92, %c2_93, %c0_94, %c0_95] : memref<1x4x16x16xf32, #tpu.memory_space<vmem>>, vector<1x1x16x16xf32>
    %97 = vector.shape_cast %96 : vector<1x1x16x16xf32> to vector<16x16xf32>
    %98 = vector.shape_cast %95 : vector<16x16xf32> to vector<1x1x16x16xf32>
    tpu.vector_store %arg3[%c0_92, %c2_93, %c0_94, %c0_95], %98 {strides = array<i32>} : memref<1x4x16x16xf32, #tpu.memory_space<vmem>>, vector<1x1x16x16xf32>,
    %c0_96 = arith.constant 0 : index
    %c2_97 = arith.constant 2 : index
    %c0_98 = arith.constant 0 : index
    %c0_99 = arith.constant 0 : index
    %99 = vector.load %arg2[%c0_96, %c2_97, %c0_98, %c0_99] : memref<1x4x16x16xf32, #tpu.memory_space<vmem>>, vector<1x1x16x16xf32>
    %100 = vector.shape_cast %99 : vector<1x1x16x16xf32> to vector<16x16xf32>
    %cst_100 = arith.constant 0.238994271 : f32
    %101 = vector.broadcast %cst_100 : f32 to vector<16x16xf32>
    %102 = arith.mulf %100, %101 : vector<16x16xf32>
    %c0_101 = arith.constant 0 : index
    %c3_102 = arith.constant 3 : index
    %c0_103 = arith.constant 0 : index
    %c0_104 = arith.constant 0 : index
    %103 = vector.load %arg2[%c0_101, %c3_102, %c0_103, %c0_104] : memref<1x4x16x16xf32, #tpu.memory_space<vmem>>, vector<1x1x16x16xf32>
    %104 = vector.shape_cast %103 : vector<1x1x16x16xf32> to vector<16x16xf32>
    %cst_105 = arith.constant 0.522011459 : f32
    %105 = vector.broadcast %cst_105 : f32 to vector<16x16xf32>
    %106 = arith.mulf %104, %105 : vector<16x16xf32>
    %107 = arith.addf %102, %106 : vector<16x16xf32>
    %c0_106 = arith.constant 0 : index
    %c2_107 = arith.constant 2 : index
    %c0_108 = arith.constant 0 : index
    %c0_109 = arith.constant 0 : index
    %108 = vector.load %arg2[%c0_106, %c2_107, %c0_108, %c0_109] : memref<1x4x16x16xf32, #tpu.memory_space<vmem>>, vector<1x1x16x16xf32>
    %109 = vector.shape_cast %108 : vector<1x1x16x16xf32> to vector<16x16xf32>
    %cst_110 = arith.constant 0.238994271 : f32
    %110 = vector.broadcast %cst_110 : f32 to vector<16x16xf32>
    %111 = arith.mulf %109, %110 : vector<16x16xf32>
    %112 = arith.addf %107, %111 : vector<16x16xf32>
    %c0_111 = arith.constant 0 : index
    %c1_112 = arith.constant 1 : index
    %113 = vector.load %arg4[%c0_111, %c1_112] : memref<16x18xf32, #tpu.memory_space<vmem>>, vector<16x16xf32>
    tpu.vector_store %arg4[%c0_111, %c1_112], %112 {strides = array<i32>} : memref<16x18xf32, #tpu.memory_space<vmem>>, vector<16x16xf32>,
    %114 = vector.extract_strided_slice %112 {offsets = [0, 1], sizes = [16, 1], strides = [1, 1]} : vector<16x16xf32> to vector<16x1xf32>
    %c0_113 = arith.constant 0 : index
    %c0_114 = arith.constant 0 : index
    %115 = vector.load %arg4[%c0_113, %c0_114] : memref<16x18xf32, #tpu.memory_space<vmem>>, vector<16x1xf32>
    tpu.vector_store %arg4[%c0_113, %c0_114], %114 {strides = array<i32>} : memref<16x18xf32, #tpu.memory_space<vmem>>, vector<16x1xf32>,
    %116 = vector.extract_strided_slice %112 {offsets = [0, 14], sizes = [16, 1], strides = [1, 1]} : vector<16x16xf32> to vector<16x1xf32>
    %c0_115 = arith.constant 0 : index
    %c17_116 = arith.constant 17 : index
    %117 = vector.load %arg4[%c0_115, %c17_116] : memref<16x18xf32, #tpu.memory_space<vmem>>, vector<16x1xf32>
    tpu.vector_store %arg4[%c0_115, %c17_116], %116 {strides = array<i32>} : memref<16x18xf32, #tpu.memory_space<vmem>>, vector<16x1xf32>,
    %c0_117 = arith.constant 0 : index
    %c0_118 = arith.constant 0 : index
    %118 = vector.load %arg4[%c0_117, %c0_118] : memref<16x18xf32, #tpu.memory_space<vmem>>, vector<16x16xf32>
    %cst_119 = arith.constant 0.238994271 : f32
    %119 = vector.broadcast %cst_119 : f32 to vector<16x16xf32>
    %120 = arith.mulf %119, %118 : vector<16x16xf32>
    %c0_120 = arith.constant 0 : index
    %c1_121 = arith.constant 1 : index
    %121 = vector.load %arg4[%c0_120, %c1_121] : memref<16x18xf32, #tpu.memory_space<vmem>>, vector<16x16xf32>
    %cst_122 = arith.constant 0.522011459 : f32
    %122 = vector.broadcast %cst_122 : f32 to vector<16x16xf32>
    %123 = arith.mulf %122, %121 : vector<16x16xf32>
    %124 = arith.addf %120, %123 : vector<16x16xf32>
    %c0_123 = arith.constant 0 : index
    %c2_124 = arith.constant 2 : index
    %125 = vector.load %arg4[%c0_123, %c2_124] : memref<16x18xf32, #tpu.memory_space<vmem>>, vector<16x16xf32>
    %cst_125 = arith.constant 0.238994271 : f32
    %126 = vector.broadcast %cst_125 : f32 to vector<16x16xf32>
    %127 = arith.mulf %126, %125 : vector<16x16xf32>
    %128 = arith.addf %124, %127 : vector<16x16xf32>
    %c0_126 = arith.constant 0 : index
    %c3_127 = arith.constant 3 : index
    %c0_128 = arith.constant 0 : index
    %c0_129 = arith.constant 0 : index
    %129 = vector.load %arg3[%c0_126, %c3_127, %c0_128, %c0_129] : memref<1x4x16x16xf32, #tpu.memory_space<vmem>>, vector<1x1x16x16xf32>
    %130 = vector.shape_cast %129 : vector<1x1x16x16xf32> to vector<16x16xf32>
    %131 = vector.shape_cast %128 : vector<16x16xf32> to vector<1x1x16x16xf32>
    tpu.vector_store %arg3[%c0_126, %c3_127, %c0_128, %c0_129], %131 {strides = array<i32>} : memref<1x4x16x16xf32, #tpu.memory_space<vmem>>, vector<1x1x16x16xf32>,
    return
  }
  func.func @transform_0(%arg0: i32, %arg1: i32) -> (i32, i32, i32, i32) {
    %c0_i32 = arith.constant 0 : i32
    %c0_i32_0 = arith.constant 0 : i32
    %c0_i32_1 = arith.constant 0 : i32
    return %arg0, %c0_i32, %arg1, %c0_i32_0 : i32, i32, i32, i32
  }
  func.func @transform_1(%arg0: i32, %arg1: i32) -> (i32, i32, i32, i32) {
    %c0_i32 = arith.constant 0 : i32
    %c0_i32_0 = arith.constant 0 : i32
    %c0_i32_1 = arith.constant 0 : i32
    return %arg0, %c0_i32, %arg1, %c0_i32_0 : i32, i32, i32, i32
  }
}

</mosaic_0001>

<bundles_post_ra>
// kernel: tpu_custom_call.1
= control target key start
LH: loop header
LB: loop body
LE: loop exit
PB: predicated region body
PF: predicated region fallthrough
CT: control target
= control target key end

     0   :  { %6 = vsyncpa [#allocation4], 0  ;;  %s1055_s0 = inlined_call_operand.hbm [shape: f32[2,4,16,16], index: 0, kind: input, shape index: {}]   ;;  %s1056_s1 = inlined_call_operand.hbm [shape: f32[2,4,16,16], index: 1, kind: output, shape index: {}]  }
   0x1   :  { %8 = vsyncpa [#allocation4 + $0x1], 0 }
   0x2   :  { %9 = vsyncpa [#allocation5], 0 }
   0x3   :  { %11 = vsyncpa [#allocation5 + $0x1], 0  ;;  %s783_s6 = smov 0   ;;  %s785_s7 = smov 0  }
   0x4   :  { %s787_s8 = smov 0   ;;  %s789_s9 = smov 0  }
   0x5   :  { %s791_s10 = smov 0   ;;  %s793_s11 = smov 0  }
   0x6 LB: > { %s540_s12 = sadd.s32 4294967295, %s761_s11   ;;  %s541_s13 = sadd.s32 4294967294, %s761_s11   ;;  %s761_s11 = sphi %s793_s11, %s17_s11   ;;  %s757_s10 = sphi %s791_s10, %s1071_s10   ;;  %s753_s9 = sphi %s789_s9, %s1070_s9   ;;  %s749_s8 = sphi %s787_s8, %s1069_s8   ;;  %s745_s7 = sphi %s785_s7, %s1068_s7   ;;  %s741_s6 = sphi %s783_s6, %s1067_s6  }
   0x7   : > { %s29_s14 = sadd.s32 1, %s757_s10  ;;  %s38_s15 = sadd.s32 1, %s749_s8 }
   0x8   : > { %p31_p0 = scmp.ge.s32.totalorder %s29_s14, 2  ;;  %p45_p1 = scmp.ne.s32.totalorder %s749_s8, %s745_s7 }
   0x9   : > { %p46_p2 = scmp.eq.s32.totalorder %s761_s11, 0  ;;  %p51_p3 = scmp.ne.s32.totalorder %s745_s7, %s741_s6 }
   0xa   : > { %s1073_s14 = smov (%p31_p0, %s29_s14), 0  ;;  %p52_p5 = scmp.eq.s32.totalorder %s540_s12, 0 }
   0xb   : > { %p824_p4 = por %p46_p2, %p45_p1  ;;  %s33_s17 = ssub.s32 %s757_s10, %s1073_s14 }
   0xc   : > { %p77_p6 = scmp.eq.s32.totalorder %s540_s12, 1  ;;  %p36_p7 = scmp.eq.s32.totalorder %s33_s17, 0 }
   0xd   : > { %p830_p8 = por %p52_p5, %p51_p3  ;;  %p83_p10 = scmp.eq.s32.totalorder %s541_s13, 1 }
   0xe   : > { %p834_p9 = por %p77_p6, %p45_p1  ;;  %p591_p13 = scmp.lt.s32.totalorder %s761_s11, 2 }
   0xf   : > { %s839_s20 = scalar_select %p36_p7, %s749_s8, %s38_s15  }
  0x10   : > { %s1060_s19 = scalar_select %p834_p9, 1, 0 }
  0x11   : > { %p841_p11 = por %p83_p10, %p51_p3  ;;  %s103_s22 = sand.u32 1, %s749_s8  }
  0x12   : > { %s544_s23 = sshll.u32 %s103_s22, 6  ;;  %s577_s24 = sshll.u32 %s757_s10, 10 }
  0x13   : > { %s1061_s21 = scalar_select %p841_p11, 1, 0 }
  0x14   : > { %s852_s27 = scalar_lea.hbm %s1055_s0, %s577_s24  ;;  %s107_s28 = scalar_lea.vmem [#allocation3], %s544_s23 }
  0x15   : > { %s116_s29 = sshll.u32 %s107_s28, 4  ;;  %p858_p0 = pnand %p591_p13, %p824_p4  ;;  %s854_s29 = int_to_ptr.vmem [resolvable:$true] %s116_s29 }
  0x16   : > { %s863_s2 = scalar_lea.sflag [#allocation4], %s103_s22  ;;  %s649_s3 = scalar_lea.hbm %s852_s27, 1024 }
  0x17   : > { %p650_p2 = scmp.ne.s32.totalorder %s852_s27, %s649_s3  ;;  %p651_p3 = pneg %p858_p0 }
  0x18   : > { %s654_s12 = scalar_lea.hbm %s1055_s0, 2048  ;;  %p655_p4 = scmp.lt.u32.totalorder %s852_s27, %s1055_s0 }
  0x19   : > { %p652_p5 = pnand %p651_p3, %p650_p2  ;;  %p656_p7 = scmp.lt.u32.totalorder %s654_s12, %s649_s3 }
  0x1a   : > { %p658_p13 = scmp.lt.u32.totalorder %s649_s3, %s852_s27 }
  0x1b   : > { %p653_p6 = pneg %p652_p5  ;;  %p657_p10 = por %p656_p7, %p655_p4 }
  0x1d   : > { %p659_p12 = por %p658_p13, %p657_p10 }
  0x1f   : > { %p660_p1 = pnand %p659_p12, %p653_p6 }
  0x21   : > { %663 = shalt.err (!%p660_p1)
}
  0x22   : > { %s664_s16 = scalar_lea.vmem %s854_s29, 1024  ;;  %s763_s17 = smov [#allocation3]  }
  0x23   : > { %p665_p2 = scmp.ne.s32.totalorder %s854_s29, %s664_s16  ;;  %s669_s22 = sshll.u32 %s763_s17, 4  ;;  %s670_s22 = int_to_ptr.vmem [resolvable:$false] %s669_s22 }
  0x24   : > { %s671_s23 = scalar_lea.vmem %s670_s22, 2048  ;;  %p672_p9 = scmp.lt.s32.totalorder %s854_s29, %s670_s22 }
  0x25   : > { %p667_p5 = pnand %p665_p2, %p651_p3  ;;  %p673_p4 = scmp.lt.s32.totalorder %s671_s23, %s664_s16 }
  0x27   : > { %p668_p11 = pneg %p667_p5  ;;  %p674_p7 = por %p673_p4, %p672_p9 }
  0x29   : > { %p675_p10 = pnand %p674_p7, %p668_p11 }
  0x2b   : > { %678 = shalt.err (!%p675_p10)
}
  0x2c   : > { %s764_s24 = smov 128   ;;  %s765_s25 = smov 8  }
  0x2d   : > { %586 = dma.hbm_to_vmem [thread:$0]  (!%p858_p0), %s852_s27, 1024, %s854_s29, %s863_s2, %s764_s24, %s764_s24, %s765_s25  }
  0x2e   : > { %p124_p12 = scmp.lt.s32.totalorder %s761_s11, 3  ;;  %p1063_p1 = scmp.ge.s32.totalorder %s761_s11, 1 }
  0x30   : > { %p125_p3 = pnand %p1063_p1, %p124_p12 }
  0x31   : > { %s895_s26 = sand.u32 (!%p125_p3), 1, %s745_s7  }
  0x32   : > { %128 = sbr.rel (%p125_p3) target bundleno = 370 (0x172), region = 24  ;;  %s548_s28 = sshll.u32 (!%p125_p3), %s895_s26, 6 }
  0x33   : > { %s131_s3 = scalar_lea.sflag (!%p125_p3), [#allocation4], %s895_s26  ;;  %s901_s4 = scalar_lea.vmem (!%p125_p3), [#allocation3], %s548_s28 }
  0x39   : > { %732 = dma.done.wait (%p830_p8), %s131_s3, 1024  }
  0x3a   : > { %734 = vsyncadd (%p830_p8), %s131_s3, 4294966272  ;;  %v550_v0 = vld [vmem:[%s901_s4 + $0x10] sm:$0xff]  ;;  %v160_v1 = vld [vmem:[%s901_s4] sm:$0xff]  ;;  %s766_s18 = smov 127   ;;  %s767_s27 = smov 1   ;;  %vm176_vm0 = vcmask 138248  }
  0x3b   : > { %v551_v2 = vld [vmem:[%s901_s4 + $0x18] sm:$0xff]  ;;  %v158_v3 = vmul.f32 0.23899427, %v550_v0  ;;  %v162_v4 = vmul.f32 0.52201146, %v160_v1  ;;  %v161_v6 = vld [vmem:[%s901_s4 + $0x8] sm:$0xff] }
  0x3c   : > { %v159_v5 = vmul.f32 0.23899427, %v551_v2  ;;  %v163_v8 = vmul.f32 0.52201146, %v161_v6  ;;  %v233_v11 = vmul.f32 0.52201146, %v551_v2 }
  0x3d   : > { %v164_v7 = vadd.f32 %v162_v4, %v158_v3  ;;  %v229_v13 = vmul.f32 0.23899427, %v161_v6  ;;  %v228_v14 = vmul.f32 0.23899427, %v160_v1  ;;  %v232_v15 = vmul.f32 0.52201146, %v550_v0 }
  0x3e   : > { %v165_v10 = vadd.f32 %v163_v8, %v159_v5  ;;  %v555_v16 = vld [vmem:[%s901_s4 + $0x28] sm:$0xff]  ;;  %v554_v17 = vld [vmem:[%s901_s4 + $0x20] sm:$0xff]  ;;  %s768_s29 = smov 3   ;;  %v563_v26 = vld [vmem:[%s901_s4 + $0x38] sm:$0xff]  ;;  %vm185_vm1 = vcmask 7168   ;;  %vm194_vm2 = vcmask 146568  }
  0x3f   : > { %v166_v9 = vadd.f32 %v164_v7, %v158_v3  ;;  %v235_v18 = vadd.f32 %v233_v11, %v229_v13  ;;  %v240_v19 = vmul.f32 0.23899427, %v555_v16  ;;  %v234_v20 = vadd.f32 %v232_v15, %v228_v14  ;;  %v562_v27 = vld [vmem:[%s901_s4 + $0x30] sm:$0xff]  ;;  %s769_s30 = smov 126   ;;  %s981_s2 = scalar_lea.vmem [#allocation6], %s548_s28 }
  0x40   : > { %v167_v12 = vadd.f32 %v165_v10, %v159_v5  ;;  %v239_v21 = vmul.f32 0.23899427, %v554_v17  ;;  %v305_v24 = vmul.f32 0.52201146, %v555_v16  ;;  %v304_v25 = vmul.f32 0.52201146, %v554_v17 }
  0x41   : > { %179 = vrot.lane.b32.xlu1 %v166_v9, %s766_s18  ;;  %170 = vrot.lane.b32.xlu0 %v166_v9, %s767_s27  ;;  %v242_v22 = vadd.f32 %v240_v19, %v235_v18  ;;  %v312_v29 = vmul.f32 0.23899427, %v563_v26  ;;  %v311_v31 = vmul.f32 0.23899427, %v562_v27  ;;  %v377_v34 = vmul.f32 0.52201146, %v563_v26 }
  0x42   : > { %v241_v23 = vadd.f32 %v239_v21, %v234_v20  ;;  %v307_v28 = vadd.f32 %v305_v24, %v159_v5  ;;  %v306_v30 = vadd.f32 %v304_v25, %v158_v3  ;;  %v376_v35 = vmul.f32 0.52201146, %v562_v27  ;;  %s578_s5 = sshll.u32 %s753_s9, 10  ;;  %s453_s12 = sshll.u32 %s981_s2, 4  ;;  %s1002_s12 = int_to_ptr.vmem [resolvable:$true] %s453_s12 }
  0x43   : > { %v379_v36 = vadd.f32 %v377_v34, %v240_v19  ;;  %vm223_vm3 = vcmask 130048   ;;  %s1000_s16 = scalar_lea.hbm %s1056_s1, %s578_s5  ;;  %s438_s9 = scalar_lea.sflag [#allocation5], %s895_s26 }
  0x44   : > { %v314_v32 = vadd.f32 %v312_v29, %v307_v28  ;;  %v313_v33 = vadd.f32 %v311_v31, %v306_v30  ;;  %v378_v37 = vadd.f32 %v376_v35, %v239_v21  ;;  %s679_s17 = scalar_lea.vmem %s1002_s12, 1024  ;;  %p1064_p9 = scmp.ne.s32.totalorder %s1060_s19, 0 }
  0x45   : > { %181 = vrot.lane.b32.xlu1 %v167_v12, %s766_s18  ;;  %172 = vrot.lane.b32.xlu0 %v167_v12, %s767_s27  ;;  %v381_v38 = vadd.f32 %v379_v36, %v240_v19  ;;  %p680_p8 = scmp.ne.s32.totalorder %s1002_s12, %s679_s17  ;;  %s770_s22 = smov [#allocation6]  }
  0x46   : > { %v380_v39 = vadd.f32 %v378_v37, %v239_v21  ;;  %s683_s23 = sshll.u32 %s770_s22, 4  ;;  %s684_s23 = int_to_ptr.vmem [resolvable:$false] %s683_s23 }
  0x47   : > { %p681_p11 = pnand %p680_p8, %p1064_p9  ;;  %s685_s24 = scalar_lea.vmem %s684_s23, 2048 }
  0x48   : > { %p686_p6 = scmp.lt.s32.totalorder %s1002_s12, %s684_s23  ;;  %p687_p13 = scmp.lt.s32.totalorder %s685_s24, %s679_s17 }
  0x49   : > { %190 = vrot.lane.b32.xlu1 %v167_v12, %s768_s29  ;;  %188 = vrot.lane.b32.xlu0 %v166_v9, %s768_s29  ;;  %p682_p0 = pneg %p681_p11 }
  0x4a   : > { %p688_p2 = por %p687_p13, %p686_p6 }
  0x4c   : > { %p689_p5 = pnand %p688_p2, %p682_p0 }
  0x4d   : > { %247 = vrot.lane.b32.xlu1 %v242_v22, %s767_s27  ;;  %245 = vrot.lane.b32.xlu0 %v241_v23, %s767_s27 }
  0x51   : > { %255 = vrot.lane.b32.xlu1 %v242_v22, %s766_s18  ;;  %253 = vrot.lane.b32.xlu0 %v241_v23, %s766_s18 }
  0x55   : > { %263 = vrot.lane.b32.xlu1 %v242_v22, %s768_s29  ;;  %261 = vrot.lane.b32.xlu0 %v241_v23, %s768_s29 }
  0x59   : > { %319 = vrot.lane.b32.xlu1 %v314_v32, %s767_s27  ;;  %317 = vrot.lane.b32.xlu0 %v313_v33, %s767_s27 }
  0x5d   : > { %327 = vrot.lane.b32.xlu1 %v314_v32, %s766_s18  ;;  %325 = vrot.lane.b32.xlu0 %v313_v33, %s766_s18 }
  0x61   : > { %335 = vrot.lane.b32.xlu1 %v314_v32, %s768_s29  ;;  %333 = vrot.lane.b32.xlu0 %v313_v33, %s768_s29 }
  0x65   : > { %386 = vrot.lane.b32.xlu1 %v381_v38, %s767_s27  ;;  %384 = vrot.lane.b32.xlu0 %v380_v39, %s767_s27 }
  0x69   : > { %394 = vrot.lane.b32.xlu1 %v381_v38, %s766_s18  ;;  %392 = vrot.lane.b32.xlu0 %v380_v39, %s766_s18 }
  0x6d   : > { %402 = vrot.lane.b32.xlu1 %v381_v38, %s768_s29  ;;  %400 = vrot.lane.b32.xlu0 %v380_v39, %s768_s29 }
  0xb3   : > { %v180_v40 = vpop.permute.xlu1 %179  ;;  %v171_v41 = vpop.permute.xlu0 %170 }
  0xb4   : > { %177 = vst.msk [vmem:[#allocation2] sm:$0xff] %vm176_vm0, %v171_v41 }
  0xb5   : > { %186 = vst.msk [vmem:[#allocation2] sm:$0xff] %vm185_vm1, %v180_v40 }
  0xb7   : > { %v182_v42 = vpop.permute.xlu1 %181  ;;  %v173_v43 = vpop.permute.xlu0 %172 }
  0xb8   : > { %178 = vst.msk [vmem:[#allocation2 + $0x8] sm:$0xff] %vm176_vm0, %v173_v43 }
  0xb9   : > { %187 = vst.msk [vmem:[#allocation2 + $0x8] sm:$0xff] %vm185_vm1, %v182_v42 }
  0xbb   : > { %v191_v44 = vpop.permute.xlu1 %190  ;;  %v189_v45 = vpop.permute.xlu0 %188 }
  0xbc   : > { %196 = vst.msk [vmem:[#allocation2 + $0x8] sm:$0xff] %vm194_vm2, %v191_v44  ;;  %195 = vst.msk [vmem:[#allocation2] sm:$0xff] %vm194_vm2, %v189_v45 }
  0xbf   : > { %v248_v46 = vpop.permute.xlu1 %247  ;;  %v246_v47 = vpop.permute.xlu0 %245 }
  0xc3   : > { %v198_v48 = vld [vmem:[#allocation2 + $0x8] sm:$0xff]  ;;  %v197_v49 = vld [vmem:[#allocation2] sm:$0xff]  ;;  %v256_v50 = vpop.permute.xlu1 %255  ;;  %v254_v51 = vpop.permute.xlu0 %253 }
  0xc4   : > { %252 = vst.msk [vmem:[#allocation2 + $0x8] sm:$0xff] %vm176_vm0, %v248_v46  ;;  %251 = vst.msk [vmem:[#allocation2] sm:$0xff] %vm176_vm0, %v246_v47  ;;  %v202_v52 = vmul.f32 0.52201146, %v198_v48  ;;  %v201_v53 = vmul.f32 0.52201146, %v197_v49 }
  0xc5   : > { %260 = vst.msk [vmem:[#allocation2 + $0x8] sm:$0xff] %vm185_vm1, %v256_v50  ;;  %259 = vst.msk [vmem:[#allocation2] sm:$0xff] %vm185_vm1, %v254_v51  ;;  %v200_v56 = vmul.f32 0.23899427, %v198_v48  ;;  %v199_v57 = vmul.f32 0.23899427, %v197_v49 }
  0xc6   : > { %207 = vrot.lane.b32.xlu1 %v202_v52, %s766_s18  ;;  %205 = vrot.lane.b32.xlu0 %v201_v53, %s766_s18 }
  0xc7   : > { %v264_v54 = vpop.permute.xlu1 %263  ;;  %v262_v55 = vpop.permute.xlu0 %261 }
  0xc8   : > { %268 = vst.msk [vmem:[#allocation2 + $0x8] sm:$0xff] %vm194_vm2, %v264_v54  ;;  %267 = vst.msk [vmem:[#allocation2] sm:$0xff] %vm194_vm2, %v262_v55 }
  0xca   : > { %217 = vrot.lane.b32.xlu1 %v200_v56, %s769_s30  ;;  %215 = vrot.lane.b32.xlu0 %v199_v57, %s769_s30 }
  0xcb   : > { %v320_v58 = vpop.permute.xlu1 %319  ;;  %v318_v59 = vpop.permute.xlu0 %317 }
  0xcf   : > { %v270_v60 = vld [vmem:[#allocation2 + $0x8] sm:$0xff]  ;;  %v269_v61 = vld [vmem:[#allocation2] sm:$0xff]  ;;  %v328_v62 = vpop.permute.xlu1 %327  ;;  %v326_v63 = vpop.permute.xlu0 %325 }
  0xd0   : > { %324 = vst.msk [vmem:[#allocation2 + $0x8] sm:$0xff] %vm176_vm0, %v320_v58  ;;  %323 = vst.msk [vmem:[#allocation2] sm:$0xff] %vm176_vm0, %v318_v59  ;;  %v274_v0 = vmul.f32 0.52201146, %v270_v60  ;;  %v273_v1 = vmul.f32 0.52201146, %v269_v61 }
  0xd1   : > { %332 = vst.msk [vmem:[#allocation2 + $0x8] sm:$0xff] %vm185_vm1, %v328_v62  ;;  %331 = vst.msk [vmem:[#allocation2] sm:$0xff] %vm185_vm1, %v326_v63  ;;  %v272_v4 = vmul.f32 0.23899427, %v270_v60  ;;  %v271_v5 = vmul.f32 0.23899427, %v269_v61 }
  0xd2   : > { %279 = vrot.lane.b32.xlu1 %v274_v0, %s766_s18  ;;  %277 = vrot.lane.b32.xlu0 %v273_v1, %s766_s18 }
  0xd3   : > { %v336_v2 = vpop.permute.xlu1 %335  ;;  %v334_v3 = vpop.permute.xlu0 %333 }
  0xd4   : > { %340 = vst.msk [vmem:[#allocation2 + $0x8] sm:$0xff] %vm194_vm2, %v336_v2  ;;  %339 = vst.msk [vmem:[#allocation2] sm:$0xff] %vm194_vm2, %v334_v3 }
  0xd6   : > { %289 = vrot.lane.b32.xlu1 %v272_v4, %s769_s30  ;;  %287 = vrot.lane.b32.xlu0 %v271_v5, %s769_s30 }
  0xd7   : > { %v387_v6 = vpop.permute.xlu1 %386  ;;  %v385_v7 = vpop.permute.xlu0 %384 }
  0xdb   : > { %v342_v8 = vld [vmem:[#allocation2 + $0x8] sm:$0xff]  ;;  %v341_v9 = vld [vmem:[#allocation2] sm:$0xff]  ;;  %v395_v10 = vpop.permute.xlu1 %394  ;;  %v393_v11 = vpop.permute.xlu0 %392 }
  0xdc   : > { %391 = vst.msk [vmem:[#allocation2 + $0x8] sm:$0xff] %vm176_vm0, %v387_v6  ;;  %390 = vst.msk [vmem:[#allocation2] sm:$0xff] %vm176_vm0, %v385_v7  ;;  %v346_v12 = vmul.f32 0.52201146, %v342_v8  ;;  %v345_v13 = vmul.f32 0.52201146, %v341_v9 }
  0xdd   : > { %399 = vst.msk [vmem:[#allocation2 + $0x8] sm:$0xff] %vm185_vm1, %v395_v10  ;;  %398 = vst.msk [vmem:[#allocation2] sm:$0xff] %vm185_vm1, %v393_v11  ;;  %v344_v16 = vmul.f32 0.23899427, %v342_v8  ;;  %v343_v17 = vmul.f32 0.23899427, %v341_v9 }
  0xde   : > { %351 = vrot.lane.b32.xlu1 %v346_v12, %s766_s18  ;;  %349 = vrot.lane.b32.xlu0 %v345_v13, %s766_s18 }
  0xdf   : > { %v403_v14 = vpop.permute.xlu1 %402  ;;  %v401_v15 = vpop.permute.xlu0 %400 }
  0xe0   : > { %407 = vst.msk [vmem:[#allocation2 + $0x8] sm:$0xff] %vm194_vm2, %v403_v14  ;;  %406 = vst.msk [vmem:[#allocation2] sm:$0xff] %vm194_vm2, %v401_v15 }
  0xe2   : > { %361 = vrot.lane.b32.xlu1 %v344_v16, %s769_s30  ;;  %359 = vrot.lane.b32.xlu0 %v343_v17, %s769_s30 }
  0xe7   : > { %v409_v18 = vld [vmem:[#allocation2 + $0x8] sm:$0xff]  ;;  %v408_v19 = vld [vmem:[#allocation2] sm:$0xff] }
  0xe8   : > { %v413_v20 = vmul.f32 0.52201146, %v409_v18  ;;  %v412_v21 = vmul.f32 0.52201146, %v408_v19  ;;  %v411_v22 = vmul.f32 0.23899427, %v409_v18 }
  0xe9   : > { %v410_v23 = vmul.f32 0.23899427, %v408_v19 }
  0xea   : > { %418 = vrot.lane.b32.xlu1 %v413_v20, %s766_s18  ;;  %416 = vrot.lane.b32.xlu0 %v412_v21, %s766_s18 }
  0xee   : > { %428 = vrot.lane.b32.xlu1 %v411_v22, %s769_s30  ;;  %426 = vrot.lane.b32.xlu0 %v410_v23, %s769_s30 }
 0x138   : > { %v208_v24 = vpop.permute.xlu1 %207  ;;  %v206_v25 = vpop.permute.xlu0 %205 }
 0x139   : > { %v212_v26 = vadd.f32 %v208_v24, %v200_v56  ;;  %v211_v27 = vadd.f32 %v206_v25, %v199_v57 }
 0x13c   : > { %v218_v28 = vpop.permute.xlu1 %217  ;;  %v216_v29 = vpop.permute.xlu0 %215 }
 0x13d   : > { %v222_v30 = vadd.f32 %v218_v28, %v212_v26  ;;  %v221_v31 = vadd.f32 %v216_v29, %v211_v27 }
 0x13f   : > { %225 = vst.msk [vmem:[%s981_s2 + $0x8] sm:$0xff] %vm223_vm3, %v222_v30  ;;  %224 = vst.msk [vmem:[%s981_s2] sm:$0xff] %vm223_vm3, %v221_v31 }
 0x144   : > { %v280_v32 = vpop.permute.xlu1 %279  ;;  %v278_v33 = vpop.permute.xlu0 %277 }
 0x145   : > { %v284_v34 = vadd.f32 %v280_v32, %v272_v4  ;;  %v283_v35 = vadd.f32 %v278_v33, %v271_v5 }
 0x148   : > { %v290_v36 = vpop.permute.xlu1 %289  ;;  %v288_v37 = vpop.permute.xlu0 %287 }
 0x149   : > { %v294_v38 = vadd.f32 %v290_v36, %v284_v34  ;;  %v293_v39 = vadd.f32 %v288_v37, %v283_v35 }
 0x14b   : > { %557 = vst.msk [vmem:[%s981_s2 + $0x18] sm:$0xff] %vm223_vm3, %v294_v38  ;;  %556 = vst.msk [vmem:[%s981_s2 + $0x10] sm:$0xff] %vm223_vm3, %v293_v39 }
 0x150   : > { %v352_v40 = vpop.permute.xlu1 %351  ;;  %v350_v41 = vpop.permute.xlu0 %349 }
 0x151   : > { %v356_v42 = vadd.f32 %v352_v40, %v344_v16  ;;  %v355_v43 = vadd.f32 %v350_v41, %v343_v17 }
 0x154   : > { %v362_v44 = vpop.permute.xlu1 %361  ;;  %v360_v45 = vpop.permute.xlu0 %359 }
 0x155   : > { %v366_v46 = vadd.f32 %v362_v44, %v356_v42  ;;  %v365_v47 = vadd.f32 %v360_v45, %v355_v43 }
 0x157   : > { %565 = vst.msk [vmem:[%s981_s2 + $0x28] sm:$0xff] %vm223_vm3, %v366_v46  ;;  %564 = vst.msk [vmem:[%s981_s2 + $0x20] sm:$0xff] %vm223_vm3, %v365_v47 }
 0x15c   : > { %v419_v48 = vpop.permute.xlu1 %418  ;;  %v417_v49 = vpop.permute.xlu0 %416 }
 0x15d   : > { %v423_v50 = vadd.f32 %v419_v48, %v411_v22  ;;  %v422_v51 = vadd.f32 %v417_v49, %v410_v23 }
 0x160   : > { %v429_v52 = vpop.permute.xlu1 %428  ;;  %v427_v53 = vpop.permute.xlu0 %426 }
 0x161   : > { %v433_v54 = vadd.f32 %v429_v52, %v423_v50  ;;  %v432_v55 = vadd.f32 %v427_v53, %v422_v51 }
 0x163   : > { %571 = vst.msk [vmem:[%s981_s2 + $0x38] sm:$0xff] %vm223_vm3, %v433_v54  ;;  %570 = vst.msk [vmem:[%s981_s2 + $0x30] sm:$0xff] %vm223_vm3, %v432_v55 }
 0x164   : > { %692 = shalt.err (!%p689_p5)
}
 0x165   : > { %s693_s25 = scalar_lea.hbm %s1000_s16, 1024  ;;  %s697_s4 = scalar_lea.hbm %s1056_s1, 2048 }
 0x166   : > { %p694_p4 = scmp.ne.s32.totalorder %s1000_s16, %s693_s25  ;;  %p698_p12 = scmp.lt.u32.totalorder %s1000_s16, %s1056_s1 }
 0x167   : > { %p699_p1 = scmp.lt.u32.totalorder %s697_s4, %s693_s25  ;;  %p701_p8 = scmp.lt.u32.totalorder %s693_s25, %s1000_s16 }
 0x168   : > { %p695_p7 = pnand %p694_p4, %p1064_p9 }
 0x169   : > { %p700_p3 = por %p699_p1, %p698_p12 }
 0x16a   : > { %p696_p10 = pneg %p695_p7 }
 0x16b   : > { %p702_p11 = por %p701_p8, %p700_p3 }
 0x16d   : > { %p703_p0 = pnand %p702_p11, %p696_p10 }
 0x16f   : > { %706 = shalt.err (!%p703_p0)
}
 0x170   : > { %s771_s29 = smov 128   ;;  %s772_s30 = smov 8  }
 0x171   : > { %581 = dma.vmem_to_hbm [thread:$0]  (%p1064_p9), %s1002_s12, 1024, %s1000_s16, %s438_s9, %s771_s29, %s771_s29, %s772_s30  }
 0x172 PF: > { %s468_s2 = sand.u32 1, %s741_s6   ;;  %p1065_p6 = scmp.ne.s32.totalorder %s1061_s21, 0 }
 0x173   : > { %p1066_p13 = scmp.ge.s32.totalorder %s761_s11, 2  ;;  %s469_s5 = scalar_lea.sflag [#allocation5], %s468_s2 }
 0x175   : > { %p588_p2 = pnand %p1066_p13, %p1065_p6 }
 0x177   : > { %736 = dma.done.wait (!%p588_p2), %s469_s5, 1024  }
 0x178   : > { %738 = vsyncadd (!%p588_p2), %s469_s5, 4294966272  ;;  %s17_s11 = sadd.s32 1, %s761_s11   ;;  %s1067_s6 = smov %s745_s7 }
 0x179   : > { %p14_p5 = scmp.ge.s32.totalorder %s17_s11, 4   ;;  %s1068_s7 = smov %s749_s8 }
 0x17a   : > { %s1069_s8 = smov %s839_s20  ;;  %s1070_s9 = smov %s757_s10 }
 0x17b   : > { %s1071_s10 = smov %s1073_s14  ;;  %16 = sbr.rel (!%p14_p5) target bundleno = 6 (0x6), region = 75 }
 0x182   :  { %474 = vsyncpa [#allocation4], 1 }
 0x183   :  { %476 = vsyncpa [#allocation4 + $0x1], 1 }
 0x184   :  { %477 = vsyncpa [#allocation5], 1 }
 0x185   :  { %479 = vsyncpa [#allocation5 + $0x1], 1 }

</bundles_post_ra>
